<compile_context>
chip_gen: v7x
topology: tpu7x:2x2x1
jax: 0.10.0
libtpu: 0.0.40
codegen_flags: <defaults>
</compile_context>

<pallas_src>
import functools

import jax
import jax.numpy as jnp
import numpy as np
from jax.experimental import pallas as pl
from jax.experimental.pallas import tpu as pltpu

EPS = 1e-5


def _resblock_kernel(x2_ref, w1_ref, w2_ref, g1_ref, bt1_ref, g2_ref, bt2_ref,
                     out_ref, pad_ref, *, n, h, w, c, off):
    # x2_ref  : (N*H, W*C) f32  input; one image row per sublane-row, lane = j*C + c
    # w1/w2   : (3, W*C, W*C) bf16 per-dy "row-conv" matrices (dx shift, channel
    #           mix and W zero-padding baked into the block structure; see wrapper)
    # g*/bt*  : (1, W*C) f32   BN gamma/beta pre-tiled W times along lanes
    # out_ref : (N*H, W*C) f32
    # pad_ref : (N, H_BUF, W*C) bf16 scratch; H halo only, interior rows start at
    #           `off` (a multiple of the bf16 sublane tile -> aligned bulk store)
    wc = w * c
    nh = n * h
    h_buf = pad_ref.shape[1]
    inv_cnt = 1.0 / float(n * h * w)     # BN averages over N*H*W samples per channel

    # Halo zeros: folded into two aligned full-tile stores, written once per call
    # (both convs share them; only the interior rows are rewritten per conv).
    pad_ref[:, 0:off, :] = jnp.zeros((n, off, wc), jnp.bfloat16)
    pad_ref[:, off + h:h_buf, :] = jnp.zeros((n, h_buf - off - h, wc), jnp.bfloat16)

    def conv3x3(y2d, w_ref):
        # Cast to bf16 exactly once on the aligned interior store, then run the
        # 3x3 conv as three accumulating K = W*C MXU dots (one per dy row-slab).
        pad_ref[:, off:off + h, :] = y2d.reshape(n, h, wc).astype(jnp.bfloat16)
        acc = jnp.dot(pad_ref[:, off:off + h, :].reshape(nh, wc), w_ref[1],
                      preferred_element_type=jnp.float32)
        acc += jnp.dot(pad_ref[:, off - 1:off - 1 + h, :].reshape(nh, wc), w_ref[0],
                       preferred_element_type=jnp.float32)
        acc += jnp.dot(pad_ref[:, off + 1:off + 1 + h, :].reshape(nh, wc), w_ref[2],
                       preferred_element_type=jnp.float32)
        return acc

    def bn_relu(acc, g_ref, bt_ref):
        # One-pass batch statistics in f32.  Per-channel pooling over the W lane
        # positions is a log2(W)-step roll-and-add butterfly (XLU/VPU, no MXU);
        # afterwards every lane holds its channel's total.
        sums = jnp.concatenate(
            [jnp.sum(acc, axis=0, keepdims=True),
             jnp.sum(acc * acc, axis=0, keepdims=True)], axis=0)   # (2, W*C)
        step = c
        while step < wc:
            sums = sums + pltpu.roll(sums, shift=step, axis=1)
            step *= 2
        mean = sums[0:1, :] * inv_cnt
        var = sums[1:2, :] * inv_cnt - mean * mean      # biased variance (training BN)
        scale = g_ref[...] * jax.lax.rsqrt(var + EPS)
        shift = bt_ref[...] - mean * scale
        return jnp.maximum(acc * scale + shift, 0.0)

    x2 = x2_ref[...]
    # conv1 -> BN1 -> ReLU   (conv bias omitted: cancels against the BN mean)
    y = bn_relu(conv3x3(x2, w1_ref), g1_ref, bt1_ref)
    # conv2 -> + residual -> BN2 -> ReLU
    out_ref[...] = bn_relu(conv3x3(y, w2_ref) + x2, g2_ref, bt2_ref)


def _row_conv_blocks(w_hwio, width):
    """(3, 3, C, C) HWIO kernel -> (3, W*C, W*C) per-dy matrices (lane layout).

    For each dy, the C x C tap w[dy, dx] is placed at block (j_src, j_dst) with
    j_src = j_dst + dx - 1 (out-of-range placements absent -> zero padding along
    W), so  row(i - 1 + dy) @ M[dy]  summed over dy equals the SAME-padded 3x3
    convolution of image row i in the (W*C,) lane layout.
    """
    blocks = []
    for dy in range(3):
        m = sum(jnp.kron(jnp.eye(width, k=-(dx - 1), dtype=w_hwio.dtype),
                         w_hwio[dy, dx]) for dx in range(3))
        blocks.append(m)
    return jnp.stack(blocks, axis=0)


def prepare_resblock_params(params, width):
    """Weight-only transforms, hoisted out of the per-forward path."""
    return {
        "w1": _row_conv_blocks(params["w1"], width).astype(jnp.bfloat16),
        "w2": _row_conv_blocks(params["w2"], width).astype(jnp.bfloat16),
        "g1": jnp.tile(params["g1"], (1, width)),
        "bt1": jnp.tile(params["bt1"], (1, width)),
        "g2": jnp.tile(params["g2"], (1, width)),
        "bt2": jnp.tile(params["bt2"], (1, width)),
    }


def resblock_pallas(x_nchw, prepped):
    """x_nchw: (N, C, H, W) float32 (PyTorch layout). Returns (N, C, H, W)."""
    N, C, H, W = x_nchw.shape
    WC = W * C
    assert WC % 128 == 0, "lane-dense layout needs W*C to be a multiple of 128"
    assert W & (W - 1) == 0, "roll-butterfly channel pooling needs power-of-two W"

    # NCHW -> lane-dense row layout (N*H, W*C); no spatial-padding HBM round-trip.
    x2 = jnp.transpose(x_nchw, (0, 2, 3, 1)).reshape(N * H, WC)

    OFF = 16                                   # bf16 sublane-tile aligned interior
    H_BUF = ((OFF + H + 1 + 15) // 16) * 16    # interior + halo, padded to the tile

    kernel = functools.partial(_resblock_kernel, n=N, h=H, w=W, c=C, off=OFF)
    out2 = pl.pallas_call(
        kernel,
        out_shape=jax.ShapeDtypeStruct((N * H, WC), jnp.float32),
        in_specs=[pl.BlockSpec(memory_space=pltpu.MemorySpace.VMEM)] * 7,
        out_specs=pl.BlockSpec(memory_space=pltpu.MemorySpace.VMEM),
        scratch_shapes=[pltpu.VMEM((N, H_BUF, WC), jnp.bfloat16)],
    )(x2, prepped["w1"], prepped["w2"], prepped["g1"], prepped["bt1"],
      prepped["g2"], prepped["bt2"])

    return jnp.transpose(out2.reshape(N, H, W, C), (0, 3, 1, 2))


def resblock_reference(x_nchw, params):
    """Pure-JAX reference with the module's exact semantics (incl. conv biases)."""
    x = jnp.transpose(x_nchw, (0, 2, 3, 1))

    def conv(v, w, b):
        y = jax.lax.conv_general_dilated(
            v, w, window_strides=(1, 1), padding="SAME",
            dimension_numbers=("NHWC", "HWIO", "NHWC"))
        return y + b.reshape(1, 1, 1, -1)

    def bn(v, g, bt):
        m = v.mean(axis=(0, 1, 2), keepdims=True)
        var = ((v - m) ** 2).mean(axis=(0, 1, 2), keepdims=True)
        return g.reshape(1, 1, 1, -1) * (v - m) / jnp.sqrt(var + EPS) \
            + bt.reshape(1, 1, 1, -1)

    y = jnp.maximum(bn(conv(x, params["w1"], params["b1"]),
                       params["g1"], params["bt1"]), 0.0)
    y = conv(y, params["w2"], params["b2"]) + x
    y = jnp.maximum(bn(y, params["g2"], params["bt2"]), 0.0)
    return jnp.transpose(y, (0, 3, 1, 2))


def make_params(key, c):
    ks = jax.random.split(key, 8)
    scale = 1.0 / np.sqrt(c * 9)
    return {
        "w1": jax.random.normal(ks[0], (3, 3, c, c), jnp.float32) * scale,
        "b1": jax.random.normal(ks[1], (1, c), jnp.float32) * 0.1,
        "g1": 1.0 + 0.1 * jax.random.normal(ks[2], (1, c), jnp.float32),
        "bt1": jax.random.normal(ks[3], (1, c), jnp.float32) * 0.1,
        "w2": jax.random.normal(ks[4], (3, 3, c, c), jnp.float32) * scale,
        "b2": jax.random.normal(ks[5], (1, c), jnp.float32) * 0.1,
        "g2": 1.0 + 0.1 * jax.random.normal(ks[6], (1, c), jnp.float32),
        "bt2": jax.random.normal(ks[7], (1, c), jnp.float32) * 0.1,
    }


if __name__ == "__main__":
    key = jax.random.PRNGKey(0)
    k_x, k_p = jax.random.split(key)

    N, C, H, W = 2, 8, 16, 16   # in_c == out_c required by the module; W*C = 128 lanes
    x = jax.random.normal(k_x, (N, C, H, W), jnp.float32)
    params = make_params(k_p, C)

    # Weight-only prep happens once, outside the forward path.
    prepped = prepare_resblock_params(params, W)

    out = jax.block_until_ready(resblock_pallas(x, prepped))
    ref = jax.block_until_ready(resblock_reference(x, params))

    # bf16 MXU inputs (f32 accumulation) through two stacked convs -> tolerance
    # loosened accordingly vs the pure-f32 reference.
    np.testing.assert_allclose(np.asarray(out), np.asarray(ref),
                               atol=3e-2, rtol=3e-2)
    print("KERNEL_OK")
</pallas_src>

<mosaic_0001>
module attributes {stable_mosaic.version = 11 : i64} {
  func.func @_resblock_kernel(%arg0: memref<32x128xf32, #tpu.memory_space<vmem>>, %arg1: memref<3x128x128xbf16, #tpu.memory_space<vmem>>, %arg2: memref<3x128x128xbf16, #tpu.memory_space<vmem>>, %arg3: memref<1x128xf32, #tpu.memory_space<vmem>>, %arg4: memref<1x128xf32, #tpu.memory_space<vmem>>, %arg5: memref<1x128xf32, #tpu.memory_space<vmem>>, %arg6: memref<1x128xf32, #tpu.memory_space<vmem>>, %arg7: memref<32x128xf32, #tpu.memory_space<vmem>>, %arg8: memref<2x48x128xbf16, #tpu.memory_space<vmem>>) attributes {dimension_semantics = [], scalar_prefetch = 0 : i64, scratch_operands = 1 : i64, tpu.core_type = #tpu.core_type<tc>} {
    %cst = arith.constant 0.000000e+00 : bf16
    %0 = vector.broadcast %cst : bf16 to vector<2x16x128xbf16>
    %c0 = arith.constant 0 : index
    %c0_0 = arith.constant 0 : index
    %c0_1 = arith.constant 0 : index
    %1 = vector.load %arg8[%c0, %c0_0, %c0_1] : memref<2x48x128xbf16, #tpu.memory_space<vmem>>, vector<2x16x128xbf16>
    tpu.vector_store %arg8[%c0, %c0_0, %c0_1], %0 {strides = array<i32>} : memref<2x48x128xbf16, #tpu.memory_space<vmem>>, vector<2x16x128xbf16>,
    %cst_2 = arith.constant 0.000000e+00 : bf16
    %2 = vector.broadcast %cst_2 : bf16 to vector<2x16x128xbf16>
    %c0_3 = arith.constant 0 : index
    %c32 = arith.constant 32 : index
    %c0_4 = arith.constant 0 : index
    %3 = vector.load %arg8[%c0_3, %c32, %c0_4] : memref<2x48x128xbf16, #tpu.memory_space<vmem>>, vector<2x16x128xbf16>
    tpu.vector_store %arg8[%c0_3, %c32, %c0_4], %2 {strides = array<i32>} : memref<2x48x128xbf16, #tpu.memory_space<vmem>>, vector<2x16x128xbf16>,
    %c0_5 = arith.constant 0 : index
    %c0_6 = arith.constant 0 : index
    %4 = vector.load %arg0[%c0_5, %c0_6] : memref<32x128xf32, #tpu.memory_space<vmem>>, vector<32x128xf32>
    %5 = vector.shape_cast %4 : vector<32x128xf32> to vector<2x16x128xf32>
    %6 = arith.truncf %5 : vector<2x16x128xf32> to vector<2x16x128xbf16>
    %c0_7 = arith.constant 0 : index
    %c16 = arith.constant 16 : index
    %c0_8 = arith.constant 0 : index
    %7 = vector.load %arg8[%c0_7, %c16, %c0_8] : memref<2x48x128xbf16, #tpu.memory_space<vmem>>, vector<2x16x128xbf16>
    tpu.vector_store %arg8[%c0_7, %c16, %c0_8], %6 {strides = array<i32>} : memref<2x48x128xbf16, #tpu.memory_space<vmem>>, vector<2x16x128xbf16>,
    %c0_9 = arith.constant 0 : index
    %c16_10 = arith.constant 16 : index
    %c0_11 = arith.constant 0 : index
    %8 = vector.load %arg8[%c0_9, %c16_10, %c0_11] : memref<2x48x128xbf16, #tpu.memory_space<vmem>>, vector<2x16x128xbf16>
    %9 = vector.shape_cast %8 : vector<2x16x128xbf16> to vector<32x128xbf16>
    %c1 = arith.constant 1 : index
    %c0_12 = arith.constant 0 : index
    %c0_13 = arith.constant 0 : index
    %10 = vector.load %arg1[%c1, %c0_12, %c0_13] : memref<3x128x128xbf16, #tpu.memory_space<vmem>>, vector<1x128x128xbf16>
    %11 = vector.shape_cast %10 : vector<1x128x128xbf16> to vector<128x128xbf16>
    %cst_14 = arith.constant dense<0.000000e+00> : vector<32x128xf32>
    %12 = tpu.matmul %9, %11, %cst_14 {dimension_numbers = #tpu.dot_dimension_numbers<[1], [0], [0], [1], [0, 0, 1, 1], [], []>} : vector<32x128xbf16>, vector<128x128xbf16>, vector<32x128xf32> -> vector<32x128xf32>
    %c0_15 = arith.constant 0 : index
    %c15 = arith.constant 15 : index
    %c0_16 = arith.constant 0 : index
    %13 = vector.load %arg8[%c0_15, %c15, %c0_16] : memref<2x48x128xbf16, #tpu.memory_space<vmem>>, vector<2x16x128xbf16>
    %14 = vector.shape_cast %13 : vector<2x16x128xbf16> to vector<32x128xbf16>
    %c0_17 = arith.constant 0 : index
    %c0_18 = arith.constant 0 : index
    %c0_19 = arith.constant 0 : index
    %15 = vector.load %arg1[%c0_17, %c0_18, %c0_19] : memref<3x128x128xbf16, #tpu.memory_space<vmem>>, vector<1x128x128xbf16>
    %16 = vector.shape_cast %15 : vector<1x128x128xbf16> to vector<128x128xbf16>
    %cst_20 = arith.constant dense<0.000000e+00> : vector<32x128xf32>
    %17 = tpu.matmul %14, %16, %cst_20 {dimension_numbers = #tpu.dot_dimension_numbers<[1], [0], [0], [1], [0, 0, 1, 1], [], []>} : vector<32x128xbf16>, vector<128x128xbf16>, vector<32x128xf32> -> vector<32x128xf32>
    %18 = arith.addf %12, %17 : vector<32x128xf32>
    %c0_21 = arith.constant 0 : index
    %c17 = arith.constant 17 : index
    %c0_22 = arith.constant 0 : index
    %19 = vector.load %arg8[%c0_21, %c17, %c0_22] : memref<2x48x128xbf16, #tpu.memory_space<vmem>>, vector<2x16x128xbf16>
    %20 = vector.shape_cast %19 : vector<2x16x128xbf16> to vector<32x128xbf16>
    %c2 = arith.constant 2 : index
    %c0_23 = arith.constant 0 : index
    %c0_24 = arith.constant 0 : index
    %21 = vector.load %arg1[%c2, %c0_23, %c0_24] : memref<3x128x128xbf16, #tpu.memory_space<vmem>>, vector<1x128x128xbf16>
    %22 = vector.shape_cast %21 : vector<1x128x128xbf16> to vector<128x128xbf16>
    %cst_25 = arith.constant dense<0.000000e+00> : vector<32x128xf32>
    %23 = tpu.matmul %20, %22, %cst_25 {dimension_numbers = #tpu.dot_dimension_numbers<[1], [0], [0], [1], [0, 0, 1, 1], [], []>} : vector<32x128xbf16>, vector<128x128xbf16>, vector<32x128xf32> -> vector<32x128xf32>
    %24 = arith.addf %18, %23 : vector<32x128xf32>
    %cst_26 = arith.constant dense<0.000000e+00> : vector<128xf32>
    %25 = vector.multi_reduction <add>, %24, %cst_26 [0] : vector<32x128xf32> to vector<128xf32>
    %26 = vector.shape_cast %25 : vector<128xf32> to vector<1x128xf32>
    %27 = arith.mulf %24, %24 : vector<32x128xf32>
    %cst_27 = arith.constant dense<0.000000e+00> : vector<128xf32>
    %28 = vector.multi_reduction <add>, %27, %cst_27 [0] : vector<32x128xf32> to vector<128xf32>
    %29 = vector.shape_cast %28 : vector<128xf32> to vector<1x128xf32>
    %30 = tpu.concatenate %26, %29 in 0 : vector<1x128xf32>, vector<1x128xf32> -> vector<2x128xf32>
    %c8_i32 = arith.constant 8 : i32
    %31 = tpu.dynamic_rotate %30 by %c8_i32 dim 1 : vector<2x128xf32>, i32 -> vector<2x128xf32>
    %32 = arith.addf %30, %31 : vector<2x128xf32>
    %c16_i32 = arith.constant 16 : i32
    %33 = tpu.dynamic_rotate %32 by %c16_i32 dim 1 : vector<2x128xf32>, i32 -> vector<2x128xf32>
    %34 = arith.addf %32, %33 : vector<2x128xf32>
    %c32_i32 = arith.constant 32 : i32
    %35 = tpu.dynamic_rotate %34 by %c32_i32 dim 1 : vector<2x128xf32>, i32 -> vector<2x128xf32>
    %36 = arith.addf %34, %35 : vector<2x128xf32>
    %c64_i32 = arith.constant 64 : i32
    %37 = tpu.dynamic_rotate %36 by %c64_i32 dim 1 : vector<2x128xf32>, i32 -> vector<2x128xf32>
    %38 = arith.addf %36, %37 : vector<2x128xf32>
    %39 = vector.extract_strided_slice %38 {offsets = [0, 0], sizes = [1, 128], strides = [1, 1]} : vector<2x128xf32> to vector<1x128xf32>
    %cst_28 = arith.constant 0.001953125 : f32
    %40 = vector.broadcast %cst_28 : f32 to vector<1x128xf32>
    %41 = arith.mulf %39, %40 : vector<1x128xf32>
    %42 = vector.extract_strided_slice %38 {offsets = [1, 0], sizes = [1, 128], strides = [1, 1]} : vector<2x128xf32> to vector<1x128xf32>
    %cst_29 = arith.constant 0.001953125 : f32
    %43 = vector.broadcast %cst_29 : f32 to vector<1x128xf32>
    %44 = arith.mulf %42, %43 : vector<1x128xf32>
    %45 = arith.mulf %41, %41 : vector<1x128xf32>
    %46 = arith.subf %44, %45 : vector<1x128xf32>
    %c0_30 = arith.constant 0 : index
    %c0_31 = arith.constant 0 : index
    %47 = vector.load %arg3[%c0_30, %c0_31] : memref<1x128xf32, #tpu.memory_space<vmem>>, vector<1x128xf32>
    %cst_32 = arith.constant 9.99999974E-6 : f32
    %48 = vector.broadcast %cst_32 : f32 to vector<1x128xf32>
    %49 = arith.addf %46, %48 : vector<1x128xf32>
    %50 = math.rsqrt %49 : vector<1x128xf32>
    %51 = arith.mulf %47, %50 : vector<1x128xf32>
    %c0_33 = arith.constant 0 : index
    %c0_34 = arith.constant 0 : index
    %52 = vector.load %arg4[%c0_33, %c0_34] : memref<1x128xf32, #tpu.memory_space<vmem>>, vector<1x128xf32>
    %53 = arith.mulf %41, %51 : vector<1x128xf32>
    %54 = arith.subf %52, %53 : vector<1x128xf32>
    %55 = vector.broadcast %51 : vector<1x128xf32> to vector<32x128xf32>
    %56 = arith.mulf %24, %55 : vector<32x128xf32>
    %57 = vector.broadcast %54 : vector<1x128xf32> to vector<32x128xf32>
    %58 = arith.addf %56, %57 : vector<32x128xf32>
    %cst_35 = arith.constant 0.000000e+00 : f32
    %59 = vector.broadcast %cst_35 : f32 to vector<32x128xf32>
    %60 = arith.maximumf %58, %59 : vector<32x128xf32>
    %61 = vector.shape_cast %60 : vector<32x128xf32> to vector<2x16x128xf32>
    %62 = arith.truncf %61 : vector<2x16x128xf32> to vector<2x16x128xbf16>
    %c0_36 = arith.constant 0 : index
    %c16_37 = arith.constant 16 : index
    %c0_38 = arith.constant 0 : index
    %63 = vector.load %arg8[%c0_36, %c16_37, %c0_38] : memref<2x48x128xbf16, #tpu.memory_space<vmem>>, vector<2x16x128xbf16>
    tpu.vector_store %arg8[%c0_36, %c16_37, %c0_38], %62 {strides = array<i32>} : memref<2x48x128xbf16, #tpu.memory_space<vmem>>, vector<2x16x128xbf16>,
    %c0_39 = arith.constant 0 : index
    %c16_40 = arith.constant 16 : index
    %c0_41 = arith.constant 0 : index
    %64 = vector.load %arg8[%c0_39, %c16_40, %c0_41] : memref<2x48x128xbf16, #tpu.memory_space<vmem>>, vector<2x16x128xbf16>
    %65 = vector.shape_cast %64 : vector<2x16x128xbf16> to vector<32x128xbf16>
    %c1_42 = arith.constant 1 : index
    %c0_43 = arith.constant 0 : index
    %c0_44 = arith.constant 0 : index
    %66 = vector.load %arg2[%c1_42, %c0_43, %c0_44] : memref<3x128x128xbf16, #tpu.memory_space<vmem>>, vector<1x128x128xbf16>
    %67 = vector.shape_cast %66 : vector<1x128x128xbf16> to vector<128x128xbf16>
    %cst_45 = arith.constant dense<0.000000e+00> : vector<32x128xf32>
    %68 = tpu.matmul %65, %67, %cst_45 {dimension_numbers = #tpu.dot_dimension_numbers<[1], [0], [0], [1], [0, 0, 1, 1], [], []>} : vector<32x128xbf16>, vector<128x128xbf16>, vector<32x128xf32> -> vector<32x128xf32>
    %c0_46 = arith.constant 0 : index
    %c15_47 = arith.constant 15 : index
    %c0_48 = arith.constant 0 : index
    %69 = vector.load %arg8[%c0_46, %c15_47, %c0_48] : memref<2x48x128xbf16, #tpu.memory_space<vmem>>, vector<2x16x128xbf16>
    %70 = vector.shape_cast %69 : vector<2x16x128xbf16> to vector<32x128xbf16>
    %c0_49 = arith.constant 0 : index
    %c0_50 = arith.constant 0 : index
    %c0_51 = arith.constant 0 : index
    %71 = vector.load %arg2[%c0_49, %c0_50, %c0_51] : memref<3x128x128xbf16, #tpu.memory_space<vmem>>, vector<1x128x128xbf16>
    %72 = vector.shape_cast %71 : vector<1x128x128xbf16> to vector<128x128xbf16>
    %cst_52 = arith.constant dense<0.000000e+00> : vector<32x128xf32>
    %73 = tpu.matmul %70, %72, %cst_52 {dimension_numbers = #tpu.dot_dimension_numbers<[1], [0], [0], [1], [0, 0, 1, 1], [], []>} : vector<32x128xbf16>, vector<128x128xbf16>, vector<32x128xf32> -> vector<32x128xf32>
    %74 = arith.addf %68, %73 : vector<32x128xf32>
    %c0_53 = arith.constant 0 : index
    %c17_54 = arith.constant 17 : index
    %c0_55 = arith.constant 0 : index
    %75 = vector.load %arg8[%c0_53, %c17_54, %c0_55] : memref<2x48x128xbf16, #tpu.memory_space<vmem>>, vector<2x16x128xbf16>
    %76 = vector.shape_cast %75 : vector<2x16x128xbf16> to vector<32x128xbf16>
    %c2_56 = arith.constant 2 : index
    %c0_57 = arith.constant 0 : index
    %c0_58 = arith.constant 0 : index
    %77 = vector.load %arg2[%c2_56, %c0_57, %c0_58] : memref<3x128x128xbf16, #tpu.memory_space<vmem>>, vector<1x128x128xbf16>
    %78 = vector.shape_cast %77 : vector<1x128x128xbf16> to vector<128x128xbf16>
    %cst_59 = arith.constant dense<0.000000e+00> : vector<32x128xf32>
    %79 = tpu.matmul %76, %78, %cst_59 {dimension_numbers = #tpu.dot_dimension_numbers<[1], [0], [0], [1], [0, 0, 1, 1], [], []>} : vector<32x128xbf16>, vector<128x128xbf16>, vector<32x128xf32> -> vector<32x128xf32>
    %80 = arith.addf %74, %79 : vector<32x128xf32>
    %81 = arith.addf %80, %4 : vector<32x128xf32>
    %cst_60 = arith.constant dense<0.000000e+00> : vector<128xf32>
    %82 = vector.multi_reduction <add>, %81, %cst_60 [0] : vector<32x128xf32> to vector<128xf32>
    %83 = vector.shape_cast %82 : vector<128xf32> to vector<1x128xf32>
    %84 = arith.mulf %81, %81 : vector<32x128xf32>
    %cst_61 = arith.constant dense<0.000000e+00> : vector<128xf32>
    %85 = vector.multi_reduction <add>, %84, %cst_61 [0] : vector<32x128xf32> to vector<128xf32>
    %86 = vector.shape_cast %85 : vector<128xf32> to vector<1x128xf32>
    %87 = tpu.concatenate %83, %86 in 0 : vector<1x128xf32>, vector<1x128xf32> -> vector<2x128xf32>
    %c8_i32_62 = arith.constant 8 : i32
    %88 = tpu.dynamic_rotate %87 by %c8_i32_62 dim 1 : vector<2x128xf32>, i32 -> vector<2x128xf32>
    %89 = arith.addf %87, %88 : vector<2x128xf32>
    %c16_i32_63 = arith.constant 16 : i32
    %90 = tpu.dynamic_rotate %89 by %c16_i32_63 dim 1 : vector<2x128xf32>, i32 -> vector<2x128xf32>
    %91 = arith.addf %89, %90 : vector<2x128xf32>
    %c32_i32_64 = arith.constant 32 : i32
    %92 = tpu.dynamic_rotate %91 by %c32_i32_64 dim 1 : vector<2x128xf32>, i32 -> vector<2x128xf32>
    %93 = arith.addf %91, %92 : vector<2x128xf32>
    %c64_i32_65 = arith.constant 64 : i32
    %94 = tpu.dynamic_rotate %93 by %c64_i32_65 dim 1 : vector<2x128xf32>, i32 -> vector<2x128xf32>
    %95 = arith.addf %93, %94 : vector<2x128xf32>
    %96 = vector.extract_strided_slice %95 {offsets = [0, 0], sizes = [1, 128], strides = [1, 1]} : vector<2x128xf32> to vector<1x128xf32>
    %cst_66 = arith.constant 0.001953125 : f32
    %97 = vector.broadcast %cst_66 : f32 to vector<1x128xf32>
    %98 = arith.mulf %96, %97 : vector<1x128xf32>
    %99 = vector.extract_strided_slice %95 {offsets = [1, 0], sizes = [1, 128], strides = [1, 1]} : vector<2x128xf32> to vector<1x128xf32>
    %cst_67 = arith.constant 0.001953125 : f32
    %100 = vector.broadcast %cst_67 : f32 to vector<1x128xf32>
    %101 = arith.mulf %99, %100 : vector<1x128xf32>
    %102 = arith.mulf %98, %98 : vector<1x128xf32>
    %103 = arith.subf %101, %102 : vector<1x128xf32>
    %c0_68 = arith.constant 0 : index
    %c0_69 = arith.constant 0 : index
    %104 = vector.load %arg5[%c0_68, %c0_69] : memref<1x128xf32, #tpu.memory_space<vmem>>, vector<1x128xf32>
    %cst_70 = arith.constant 9.99999974E-6 : f32
    %105 = vector.broadcast %cst_70 : f32 to vector<1x128xf32>
    %106 = arith.addf %103, %105 : vector<1x128xf32>
    %107 = math.rsqrt %106 : vector<1x128xf32>
    %108 = arith.mulf %104, %107 : vector<1x128xf32>
    %c0_71 = arith.constant 0 : index
    %c0_72 = arith.constant 0 : index
    %109 = vector.load %arg6[%c0_71, %c0_72] : memref<1x128xf32, #tpu.memory_space<vmem>>, vector<1x128xf32>
    %110 = arith.mulf %98, %108 : vector<1x128xf32>
    %111 = arith.subf %109, %110 : vector<1x128xf32>
    %112 = vector.broadcast %108 : vector<1x128xf32> to vector<32x128xf32>
    %113 = arith.mulf %81, %112 : vector<32x128xf32>
    %114 = vector.broadcast %111 : vector<1x128xf32> to vector<32x128xf32>
    %115 = arith.addf %113, %114 : vector<32x128xf32>
    %cst_73 = arith.constant 0.000000e+00 : f32
    %116 = vector.broadcast %cst_73 : f32 to vector<32x128xf32>
    %117 = arith.maximumf %115, %116 : vector<32x128xf32>
    %c0_74 = arith.constant 0 : index
    %c0_75 = arith.constant 0 : index
    %118 = vector.load %arg7[%c0_74, %c0_75] : memref<32x128xf32, #tpu.memory_space<vmem>>, vector<32x128xf32>
    tpu.vector_store %arg7[%c0_74, %c0_75], %117 {strides = array<i32>} : memref<32x128xf32, #tpu.memory_space<vmem>>, vector<32x128xf32>,
    return
  }
}

</mosaic_0001>

<bundles_post_ra>
// kernel: tpu_custom_call.1
= control target key start
LH: loop header
LB: loop body
LE: loop exit
PB: predicated region body
PF: predicated region fallthrough
CT: control target
= control target key end

     0   :  { %12 = vsyncpa [#allocation4], 0  ;;  %s1719_s0 = inlined_call_operand.hbm [shape: f32[32,128], index: 0, kind: input, shape index: {}]   ;;  %s1720_s1 = inlined_call_operand.hbm [shape: bf16[3,128,128], index: 1, kind: input, shape index: {}]   ;;  %s1721_s2 = inlined_call_operand.hbm [shape: bf16[3,128,128], index: 2, kind: input, shape index: {}]   ;;  %s1722_s3 = inlined_call_operand.vmem [shape: f32[1,128], index: 3, kind: input, shape index: {}]   ;;  %s1723_s4 = inlined_call_operand.vmem [shape: f32[1,128], index: 4, kind: input, shape index: {}]   ;;  %s1724_s5 = inlined_call_operand.vmem [shape: f32[1,128], index: 5, kind: input, shape index: {}]   ;;  %s1725_s6 = inlined_call_operand.vmem [shape: f32[1,128], index: 6, kind: input, shape index: {}]   ;;  %s1726_s7 = inlined_call_operand.hbm [shape: f32[32,128], index: 7, kind: output, shape index: {}]  }
   0x1   :  { %13 = vsyncpa [#allocation7], 0 }
   0x2   :  { %14 = vsyncpa [#allocation5], 0  ;;  %s1504_s24 = smov [#allocation6]   ;;  %s1410_s28 = scalar_lea.hbm %s1720_s1, 3072 }
   0x3   :  { %s32_s25 = sshll.u32 %s1504_s24, 4  ;;  %p1411_p0 = scmp.ne.s32.totalorder %s1720_s1, %s1410_s28  ;;  %s33_s25 = int_to_ptr.vmem [resolvable:$true] %s32_s25 }
   0x4   :  { %p1414_p1 = scmp.lt.u32.totalorder %s1410_s28, %s1720_s1 }
   0x6   :  { %p1416_p2 = pnand %p1414_p1, %p1411_p0 }
   0x8   :  { %1419 = shalt.err (!%p1416_p2)
}
   0x9   :  { %s1420_s10 = scalar_lea.vmem %s33_s25, 3072  ;;  %p1425_p4 = scmp.lt.s32.totalorder %s33_s25, %s33_s25 }
   0xa   :  { %p1421_p3 = scmp.ne.s32.totalorder %s33_s25, %s1420_s10  ;;  %p1426_p5 = scmp.lt.s32.totalorder %s1420_s10, %s1420_s10 }
   0xc   :  { %p1427_p6 = por %p1426_p5, %p1425_p4 }
   0xe   :  { %p1428_p7 = pnand %p1427_p6, %p1421_p3 }
  0x10   :  { %1431 = shalt.err (!%p1428_p7)
}
  0x11   :  { %s1505_s11 = smov 64   ;;  %s1506_s12 = smov 4  }
  0x12   :  { %38 = dma.hbm_to_vmem [thread:$0]  %s1720_s1, 3072, %s33_s25, [#allocation7], %s1505_s11, %s1505_s11, %s1506_s12  }
  0x13   :  { %s1507_s15 = smov [#allocation3]   ;;  %s1432_s19 = scalar_lea.hbm %s1719_s0, 512 }
  0x14   :  { %s20_s16 = sshll.u32 %s1507_s15, 4  ;;  %p1433_p8 = scmp.ne.s32.totalorder %s1719_s0, %s1432_s19  ;;  %s21_s16 = int_to_ptr.vmem [resolvable:$true] %s20_s16 }
  0x15   :  { %p1436_p9 = scmp.lt.u32.totalorder %s1432_s19, %s1719_s0 }
  0x17   :  { %p1438_p10 = pnand %p1436_p9, %p1433_p8 }
  0x19   :  { %1441 = shalt.err (!%p1438_p10)
}
  0x1a   :  { %s1442_s24 = scalar_lea.vmem %s21_s16, 512  ;;  %p1447_p12 = scmp.lt.s32.totalorder %s21_s16, %s21_s16 }
  0x1b   :  { %p1443_p11 = scmp.ne.s32.totalorder %s21_s16, %s1442_s24  ;;  %p1448_p13 = scmp.lt.s32.totalorder %s1442_s24, %s1442_s24 }
  0x1d   :  { %p1449_p0 = por %p1448_p13, %p1447_p12 }
  0x1f   :  { %p1450_p1 = pnand %p1449_p0, %p1443_p11 }
  0x21   :  { %1453 = shalt.err (!%p1450_p1)
}
  0x22   :  { %s1508_s1 = smov 128   ;;  %s1509_s25 = smov 8  }
  0x23   :  { %26 = dma.hbm_to_vmem [thread:$0]  %s1719_s0, 512, %s21_s16, [#allocation4], %s1508_s1, %s1508_s1, %s1509_s25  }
  0x24   :  { %s1510_s28 = smov [#allocation8]   ;;  %s1454_s9 = scalar_lea.hbm %s1721_s2, 3072 }
  0x25   :  { %s44_s29 = sshll.u32 %s1510_s28, 4  ;;  %p1455_p2 = scmp.ne.s32.totalorder %s1721_s2, %s1454_s9  ;;  %s45_s29 = int_to_ptr.vmem [resolvable:$true] %s44_s29 }
  0x26   :  { %p1458_p3 = scmp.lt.u32.totalorder %s1454_s9, %s1721_s2 }
  0x28   :  { %p1460_p4 = pnand %p1458_p3, %p1455_p2 }
  0x2a   :  { %1463 = shalt.err (!%p1460_p4)
}
  0x2b   :  { %s1464_s17 = scalar_lea.vmem %s45_s29, 3072  ;;  %p1469_p6 = scmp.lt.s32.totalorder %s45_s29, %s45_s29 }
  0x2c   :  { %p1465_p5 = scmp.ne.s32.totalorder %s45_s29, %s1464_s17  ;;  %p1470_p7 = scmp.lt.s32.totalorder %s1464_s17, %s1464_s17 }
  0x2e   :  { %p1471_p8 = por %p1470_p7, %p1469_p6 }
  0x30   :  { %p1472_p9 = pnand %p1471_p8, %p1465_p5 }
  0x32   :  { %1475 = shalt.err (!%p1472_p9)
}
  0x33   :  { %50 = dma.hbm_to_vmem [thread:$0]  %s1721_s2, 3072, %s45_s29, [#allocation7], %s1505_s11, %s1505_s11, %s1506_s12  }
  0x34   :  { %1498 = dma.done.wait [#allocation4], 512  }
  0x35   :  { %1499 = vsyncadd [#allocation4], 4294966784 }
  0x36   :  { %1500 = dma.done.wait [#allocation7], 6144  }
  0x37   :  { %1501 = vsyncadd [#allocation7], 4294961152  ;;  %v1511_v0 = vmov 0   ;;  %v1358_v1 = vld [vmem:[#allocation6] sm:$0xff]   ;;  %v1359_v2 = vld [vmem:[#allocation6 + $0x8] sm:$0xff]   ;;  %vm510_vm2 = vcmask 1040384  }
  0x38   :  { %69 = vst [vmem:[#allocation2] sm:$0xff] %v1511_v0  ;;  %70 = vst [vmem:[#allocation2 + $0x18] sm:$0xff] %v1511_v0  ;;  %1210 = vmatprep.subr.bf16.mxu0 %v1358_v1  ;;  %v1360_v3 = vld [vmem:[#allocation6 + $0x10] sm:$0xff]   ;;  %v1361_v4 = vld [vmem:[#allocation6 + $0x18] sm:$0xff]   ;;  %vm102_vm0 = vsmask.f32 256 }
  0x39   :  { %71 = vst [vmem:[#allocation2 + $0x10] sm:$0xff] %v1511_v0  ;;  %72 = vst [vmem:[#allocation2 + $0x28] sm:$0xff] %v1511_v0  ;;  %1211 = vmatpush3.bf16.msra.mxu0 %v1358_v1  ;;  %v1601_v5 = vld [vmem:[#allocation3] sm:$0xff]  ;;  %v1603_v6 = vld [vmem:[#allocation3 + $0x8] sm:$0xff]  ;;  %vm343_vm1 = vsmask.f32 7424 }
  0x3a   :  { %1212 = vmatprep.subr.bf16.mxu0 %v1359_v2  ;;  %v1607_v8 = vpack.c.bf16 %v1603_v6, %v1601_v5  ;;  %v1362_v10 = vld [vmem:[#allocation6 + $0x20] sm:$0xff]   ;;  %v1611_v13 = vld [vmem:[#allocation3 + $0x10] sm:$0xff]  ;;  %v1613_v14 = vld [vmem:[#allocation3 + $0x18] sm:$0xff]  ;;  %s1512_s2 = smov 16   ;;  %s1513_s12 = smov 32  }
  0x3b   :  { %v1363_v17 = vld [vmem:[#allocation6 + $0x28] sm:$0xff]   ;;  %v1617_v19 = vpack.c.bf16 %v1613_v14, %v1611_v13  ;;  %v1364_v23 = vld [vmem:[#allocation6 + $0x30] sm:$0xff]   ;;  %v1365_v27 = vld [vmem:[#allocation6 + $0x38] sm:$0xff]   ;;  %s1515_s23 = smov [#allocation9]  }
  0x3c   :  { %v108_v11 = vshrl.u32 %v1607_v8, 16  ;;  %v111_v12 = vshll.u32 %v1607_v8, 16  ;;  %v1366_v30 = vld [vmem:[#allocation6 + $0x40] sm:$0xff]   ;;  %v1367_v31 = vld [vmem:[#allocation6 + $0x48] sm:$0xff]   ;;  %v1368_v33 = vld [vmem:[#allocation6 + $0x50] sm:$0xff]   ;;  %s1089_s24 = sshll.u32 %s1515_s23, 4  ;;  %s1090_s24 = int_to_ptr.vmem [resolvable:$true] %s1089_s24 }
  0x3d   :  { %1213 = vmatpush3.bf16.msra.mxu0 %v1359_v2  ;;  %v120_v22 = vshrl.u32 %v1617_v19, 16  ;;  %v123_v26 = vshll.u32 %v1617_v19, 16  ;;  %v1369_v34 = vld [vmem:[#allocation6 + $0x58] sm:$0xff]   ;;  %v1370_v35 = vld [vmem:[#allocation6 + $0x60] sm:$0xff]   ;;  %v1371_v36 = vld [vmem:[#allocation6 + $0x68] sm:$0xff]   ;;  %p1481_p11 = scmp.lt.s32.totalorder %s1090_s24, %s1090_s24 }
  0x3e   :  { %1214 = vmatprep.subr.bf16.mxu0 %v1360_v3  ;;  %v110_v16 = vrot.slane %v108_v11, 7  ;;  %v1372_v37 = vld [vmem:[#allocation6 + $0x70] sm:$0xff]   ;;  %v1373_v39 = vld [vmem:[#allocation6 + $0x78] sm:$0xff]   ;;  %v349_v40 = vrot.slane %v111_v12, 1  ;;  %v1374_v42 = vld [vmem:[#allocation6 + $0x80] sm:$0xff]  }
  0x3f   :  { %v100_v7 = vld [vmem:[#allocation2] sm:$0x80]  ;;  %v101_v21 = vld [vmem:[#allocation2 + $0x18] sm:$0x80]  ;;  %v122_v25 = vrot.slane %v120_v22, 7  ;;  %v1377_v48 = vld [vmem:[#allocation6 + $0x98] sm:$0xff]  }
  0x40   :  { %v104_v9 = vshrl.u32 %v100_v7, 16  ;;  %v113_v18 = vor.u32 %v111_v12, %v110_v16  ;;  %v116_v24 = vshrl.u32 %v101_v21, 16  ;;  %v340_v38 = vld [vmem:[#allocation2 + $0x10] sm:$0x1]  ;;  %v350_v43 = vor.u32 %v349_v40, %v108_v11  ;;  %v1375_v45 = vld [vmem:[#allocation6 + $0x88] sm:$0xff]   ;;  %v1376_v47 = vld [vmem:[#allocation6 + $0x90] sm:$0xff]  }
  0x41   :  { %1215 = vmatpush3.bf16.msra.mxu0 %v1360_v3  ;;  %v125_v29 = vor.u32 %v123_v26, %v122_v25  ;;  %v352_v41 = vshll.u32 %v340_v38, 16  ;;  %v1378_v49 = vld [vmem:[#allocation6 + $0xa0] sm:$0xff]   ;;  %v1379_v50 = vld [vmem:[#allocation6 + $0xa8] sm:$0xff]   ;;  %v1380_v51 = vld [vmem:[#allocation6 + $0xb0] sm:$0xff]   ;;  %v361_v53 = vrot.slane %v123_v26, 1 }
  0x42   :  { %1216 = vmatprep.subr.bf16.mxu0 %v1361_v4  ;;  %v106_v15 = vrot.slane %v104_v9, 7  ;;  %v118_v28 = vrot.slane %v116_v24, 7  ;;  %v342_v52 = vld [vmem:[#allocation2 + $0x28] sm:$0x1]  ;;  %v1388_v38 = vld [vmem:[#allocation8 + $0x30] sm:$0xff]   ;;  %v1390_v40 = vld [vmem:[#allocation8 + $0x40] sm:$0xff]  }
  0x43   :  { %v354_v44 = vrot.slane %v352_v41, 1  ;;  %v364_v54 = vshll.u32 %v342_v52, 16  ;;  %v1381_v55 = vld [vmem:[#allocation6 + $0xb8] sm:$0xff]   ;;  %v362_v56 = vor.u32 %v361_v53, %v120_v22 }
  0x44   :  { %v114_v20 = vsel %vm102_vm0, %v106_v15, %v113_v18  ;;  %v126_v32 = vsel %vm102_vm0, %v118_v28, %v125_v29 }
  0x45   :  { %1217 = vmatpush3.bf16.msra.mxu0 %v1361_v4  ;;  %1226 = vmatprep.mubr.bf16.mxu0 %v114_v20  ;;  %v355_v46 = vsel %vm343_vm1, %v350_v43, %v354_v44  ;;  %v366_v57 = vrot.slane %v364_v54, 1 }
  0x46   :  { %1218 = vmatprep.subr.bf16.mxu0 %v1362_v10 }
  0x47   :  { %v367_v58 = vsel %vm343_vm1, %v362_v56, %v366_v57  ;;  %v530_v57 = vld [vmem:[%s1722_s3] sm:$0x1] }
  0x49   :  { %1219 = vmatpush3.bf16.msra.mxu0 %v1362_v10 }
  0x4a   :  { %1220 = vmatprep.subr.bf16.mxu0 %v1363_v17 }
  0x4d   :  { %1221 = vmatpush3.bf16.msra.mxu0 %v1363_v17 }
  0x4e   :  { %1222 = vmatprep.subr.bf16.mxu0 %v1364_v23 }
  0x51   :  { %1223 = vmatpush3.bf16.msra.mxu0 %v1364_v23 }
  0x52   :  { %1224 = vmatprep.subr.bf16.mxu0 %v1365_v27 }
  0x55   :  { %1225 = vmatpush3.bf16.msra.mxu0 %v1365_v27 }
  0x56   :  { %1230 = vmatprep.subr.bf16.mxu0 %v1366_v30 }
  0x58   :  { %1227 = vmatmul.mubr.bf16.vlgmr.msra.gmra.mrb[0].mxu0 %v126_v32  ;;  %v1382_v32 = vld [vmem:[#allocation8] sm:$0xff]  }
  0x59   :  { %1231 = vmatpush3.bf16.msra.mxu0 %v1366_v30  ;;  %1246 = vmatprep.mubr.bf16.mxu0 %v1607_v8 }
  0x5a   :  { %1232 = vmatprep.subr.bf16.mxu0 %v1367_v31  ;;  %1270 = vmatprep.subr.bf16.mxu1 %v1382_v32 }
  0x5b   :  { %1271 = vmatpush3.bf16.msra.mxu1 %v1382_v32 }
  0x5d   :  { %1233 = vmatpush3.bf16.msra.mxu0 %v1367_v31 }
  0x5e   :  { %1234 = vmatprep.subr.bf16.mxu0 %v1368_v33 }
  0x61   :  { %1235 = vmatpush3.bf16.msra.mxu0 %v1368_v33  ;;  %v1383_v33 = vld [vmem:[#allocation8 + $0x8] sm:$0xff]  }
  0x62   :  { %1236 = vmatprep.subr.bf16.mxu0 %v1369_v34  ;;  %1272 = vmatprep.subr.bf16.mxu1 %v1383_v33 }
  0x63   :  { %1273 = vmatpush3.bf16.msra.mxu1 %v1383_v33 }
  0x65   :  { %1237 = vmatpush3.bf16.msra.mxu0 %v1369_v34  ;;  %v1384_v34 = vld [vmem:[#allocation8 + $0x10] sm:$0xff]  }
  0x66   :  { %1238 = vmatprep.subr.bf16.mxu0 %v1370_v35  ;;  %1274 = vmatprep.subr.bf16.mxu1 %v1384_v34 }
  0x67   :  { %1275 = vmatpush3.bf16.msra.mxu1 %v1384_v34 }
  0x69   :  { %1239 = vmatpush3.bf16.msra.mxu0 %v1370_v35  ;;  %v1385_v35 = vld [vmem:[#allocation8 + $0x18] sm:$0xff]  }
  0x6a   :  { %1240 = vmatprep.subr.bf16.mxu0 %v1371_v36  ;;  %1276 = vmatprep.subr.bf16.mxu1 %v1385_v35 }
  0x6b   :  { %1277 = vmatpush3.bf16.msra.mxu1 %v1385_v35 }
  0x6d   :  { %1241 = vmatpush3.bf16.msra.mxu0 %v1371_v36  ;;  %v1386_v36 = vld [vmem:[#allocation8 + $0x20] sm:$0xff]  }
  0x6e   :  { %1242 = vmatprep.subr.bf16.mxu0 %v1372_v37  ;;  %1278 = vmatprep.subr.bf16.mxu1 %v1386_v36 }
  0x6f   :  { %1279 = vmatpush3.bf16.msra.mxu1 %v1386_v36 }
  0x71   :  { %1243 = vmatpush3.bf16.msra.mxu0 %v1372_v37  ;;  %v1387_v37 = vld [vmem:[#allocation8 + $0x28] sm:$0xff]  }
  0x72   :  { %1244 = vmatprep.subr.bf16.mxu0 %v1373_v39  ;;  %1280 = vmatprep.subr.bf16.mxu1 %v1387_v37 }
  0x73   :  { %1281 = vmatpush3.bf16.msra.mxu1 %v1387_v37 }
  0x74   :  { %1282 = vmatprep.subr.bf16.mxu1 %v1388_v38 }
  0x75   :  { %1245 = vmatpush3.bf16.msra.mxu0 %v1373_v39  ;;  %v1389_v39 = vld [vmem:[#allocation8 + $0x38] sm:$0xff]  }
  0x76   :  { %1250 = vmatprep.subr.bf16.mxu0 %v1374_v42 }
  0x77   :  { %1283 = vmatpush3.bf16.msra.mxu1 %v1388_v38  ;;  %v1391_v38 = vld [vmem:[#allocation8 + $0x48] sm:$0xff]  }
  0x78   :  { %1247 = vmatmul.mubr.bf16.vlgmr.msra.gmra.mrb[0].mxu0 %v1617_v19  ;;  %1284 = vmatprep.subr.bf16.mxu1 %v1389_v39 }
  0x79   :  { %1251 = vmatpush3.bf16.msra.mxu0 %v1374_v42  ;;  %1266 = vmatprep.mubr.bf16.mxu0 %v355_v46 }
  0x7a   :  { %1252 = vmatprep.subr.bf16.mxu0 %v1375_v45 }
  0x7b   :  { %1285 = vmatpush3.bf16.msra.mxu1 %v1389_v39  ;;  %v1392_v39 = vld [vmem:[#allocation8 + $0x50] sm:$0xff]  }
  0x7c   :  { %1290 = vmatprep.subr.bf16.mxu1 %v1390_v40 }
  0x7d   :  { %1253 = vmatpush3.bf16.msra.mxu0 %v1375_v45 }
  0x7e   :  { %1254 = vmatprep.subr.bf16.mxu0 %v1376_v47 }
  0x81   :  { %1255 = vmatpush3.bf16.msra.mxu0 %v1376_v47 }
  0x82   :  { %1256 = vmatprep.subr.bf16.mxu0 %v1377_v48 }
  0x85   :  { %1257 = vmatpush3.bf16.msra.mxu0 %v1377_v48  ;;  %v1514_v48 = vmov 1966171168  }
  0x86   :  { %1258 = vmatprep.subr.bf16.mxu0 %v1378_v49 }
  0x89   :  { %1259 = vmatpush3.bf16.msra.mxu0 %v1378_v49  ;;  %v535_v49 = vunpack.c.l.s4 %v1514_v48  ;;  %v1398_v48 = vld [vmem:[#allocation8 + $0x80] sm:$0xff]  }
  0x8a   :  { %1260 = vmatprep.subr.bf16.mxu0 %v1379_v50 }
  0x8d   :  { %1261 = vmatpush3.bf16.msra.mxu0 %v1379_v50  ;;  %v537_v50 = vlaneseq }
  0x8e   :  { %1262 = vmatprep.subr.bf16.mxu0 %v1380_v51 }
  0x8f   :  { %v538_v52 = vshrl.u32 %v537_v50, 7 }
  0x91   :  { %1263 = vmatpush3.bf16.msra.mxu0 %v1380_v51  ;;  %v536_v51 = vunpack.c.0.s8 %v535_v49 }
  0x92   :  { %1264 = vmatprep.subr.bf16.mxu0 %v1381_v55 }
  0x93   :  { %v1660_v53 = vsub.s32 %v536_v51, %v538_v52  ;;  %v1399_v51 = vld [vmem:[#allocation8 + $0x88] sm:$0xff]  }
  0x95   :  { %1265 = vmatpush3.bf16.msra.mxu0 %v1381_v55 }
  0x98   :  { %1267 = vmatmul.mubr.bf16.vlgmr.msra.gmra.mrb[0].mxu0 %v367_v58  ;;  %v1666_v58 = vsub.s32 0, %v538_v52 }
 0x16b   :  { %v1635_v59 = vpop.f32.mrb[0].mxu0 }
 0x16c   :  { %v1637_v60 = vpop.f32.mrb[1].mxu0  ;;  %v499_v2 = vmul.f32 %v1635_v59, %v1635_v59 }
 0x16d   :  { %v1639_v61 = vpop.f32.mrb[2].mxu0  ;;  %v497_v63 = vmul.f32 %v1637_v60, %v1637_v60 }
 0x16e   :  { %v1641_v62 = vpop.f32.mrb[3].mxu0  ;;  %v500_v7 = vmul.f32 %v1639_v61, %v1639_v61 }
 0x16f   :  { %v488_v0 = vadd.f32 %v1641_v62, %v1637_v60  ;;  %v498_v1 = vmul.f32 %v1641_v62, %v1641_v62 }
 0x171   :  { %v489_v3 = vadd.f32 %v1635_v59, %v488_v0  ;;  %v501_v4 = vadd.f32 %v498_v1, %v497_v63  ;;  %v551_v1 = vld [vmem:[%s1723_s4] sm:$0x1] }
 0x173   :  { %v490_v8 = vadd.f32 %v1639_v61, %v489_v3  ;;  %v502_v9 = vadd.f32 %v501_v4, %v499_v2 }
 0x175   :  { %v491_v10 = vrot.slane %v490_v8, 4  ;;  %v503_v11 = vadd.f32 %v502_v9, %v500_v7 }
 0x177   :  { %v492_v12 = vadd.f32 %v491_v10, %v490_v8  ;;  %v504_v15 = vrot.slane %v503_v11, 4 }
 0x179   :  { %v493_v16 = vrot.slane %v492_v12, 2  ;;  %v505_v17 = vadd.f32 %v504_v15, %v503_v11 }
 0x17b   :  { %v494_v18 = vadd.f32 %v493_v16, %v492_v12  ;;  %v506_v19 = vrot.slane %v505_v17, 2 }
 0x17d   :  { %v495_v20 = vrot.slane %v494_v18, 1  ;;  %v507_v21 = vadd.f32 %v506_v19, %v505_v17  ;;  %v602_v19 = vld [vmem:[#allocation2 + $0x18] sm:$0x80] }
 0x17f   :  { %v508_v22 = vrot.slane %v507_v21, 1  ;;  %v496_v23 = vadd.f32 %v495_v20, %v494_v18  ;;  %v601_v18 = vld [vmem:[#allocation2] sm:$0x80] }
 0x181   :  { %v509_v24 = vadd.f32 %v508_v22, %v507_v21 }
 0x183   :  { %v511_v25 = vsel %vm510_vm2, %v496_v23, %v509_v24  ;;  %v604_v24 = vshrl.u32 %v601_v18, 16 }
 0x184   :  { %512 = vrot.lane.b32.xlu0 %v511_v25, %s1509_s25 }
 0x1f6   :  { %v513_v26 = vpop.permute.xlu0 %512 }
 0x1f7   :  { %v514_v27 = vadd.f32 %v513_v26, %v511_v25 }
 0x1f9   :  { %515 = vrot.lane.b32.xlu0 %v514_v27, %s1512_s2 }
 0x26b   :  { %v516_v28 = vpop.permute.xlu0 %515 }
 0x26c   :  { %v517_v29 = vadd.f32 %v516_v28, %v514_v27 }
 0x26e   :  { %518 = vrot.lane.b32.xlu1 %v517_v29, %s1513_s12 }
 0x2e0   :  { %v519_v30 = vpop.permute.xlu1 %518 }
 0x2e1   :  { %v520_v31 = vadd.f32 %v519_v30, %v517_v29 }
 0x2e3   :  { %521 = vrot.lane.b32.xlu1 %v520_v31, %s1505_s11 }
 0x355   :  { %v522_v41 = vpop.permute.xlu1 %521 }
 0x356   :  { %v523_v42 = vadd.f32 %v522_v41, %v520_v31  ;;  %v1393_v41 = vld [vmem:[#allocation8 + $0x58] sm:$0xff]  }
 0x358   :  { %v524_v43 = vmul.f32 0.001953125, %v523_v42  ;;  %v1394_v42 = vld [vmem:[#allocation8 + $0x60] sm:$0xff]  }
 0x35a   :  { %v525_v44 = vmul.f32 %v524_v43, %v524_v43 }
 0x35c   :  { %v527_v45 = vrot.slane %v525_v44, 7  ;;  %v1396_v44 = vld [vmem:[#allocation8 + $0x70] sm:$0xff]  }
 0x35e   :  { %v529_v46 = vsub.f32 %v524_v43, %v527_v45  ;;  %v840_v45 = vld [vmem:[#allocation2 + $0x10] sm:$0x1] }
 0x360   :  { %v531_v47 = vadd.f32 1e-05, %v529_v46  ;;  %v1397_v46 = vld [vmem:[#allocation8 + $0x78] sm:$0xff]  }
 0x362   :  { %1406 = vrsqrt.f32 %v531_v47  ;;  %v851_v47 = vshll.u32 %v840_v45, 16 }
 0x364   :  { %v853_v50 = vrot.slane %v851_v47, 1 }
 0x36c   :  { %v1407_v54 = vpop.eup %1406 }
 0x36d   :  { %v540_v55 = vrot.slane %v1407_v54, %v1660_v53  ;;  %v1400_v54 = vld [vmem:[#allocation8 + $0x90] sm:$0xff]  }
 0x36f   :  { %v541_v56 = vcombine.high %v540_v55, %v540_v55  ;;  %v1401_v55 = vld [vmem:[#allocation8 + $0x98] sm:$0xff]  }
 0x371   :  { %v548_v63 = vrot.slane %v541_v56, %v1660_v53  ;;  %v1402_v56 = vld [vmem:[#allocation8 + $0xa0] sm:$0xff]  }
 0x373   :  { %v550_v0 = vmul.f32 %v548_v63, %v530_v57  ;;  %v1403_v57 = vld [vmem:[#allocation8 + $0xa8] sm:$0xff]   ;;  %v1404_v63 = vld [vmem:[#allocation8 + $0xb0] sm:$0xff]  }
 0x375   :  { %v552_v2 = vmul.f32 %v550_v0, %v524_v43  ;;  %v558_v3 = vrot.slane %v550_v0, %v1666_v58  ;;  %v1395_v43 = vld [vmem:[#allocation8 + $0x68] sm:$0xff]   ;;  %v842_v0 = vld [vmem:[#allocation2 + $0x28] sm:$0x1] }
 0x377   :  { %v553_v4 = vsub.f32 %v551_v1, %v552_v2  ;;  %v560_v7 = vmul.f32 %v558_v3, %v1637_v60  ;;  %v561_v8 = vmul.f32 %v558_v3, %v1641_v62  ;;  %v562_v9 = vmul.f32 %v1635_v59, %v558_v3  ;;  %v1405_v1 = vld [vmem:[#allocation8 + $0xb8] sm:$0xff]  }
 0x378   :  { %v563_v10 = vmul.f32 %v1639_v61, %v558_v3  ;;  %v616_v60 = vshrl.u32 %v602_v19, 16  ;;  %v606_v61 = vrot.slane %v604_v24, 7  ;;  %v863_v2 = vshll.u32 %v842_v0, 16 }
 0x379   :  { %v568_v11 = vrot.slane %v553_v4, %v1666_v58 }
 0x37a   :  { %v618_v28 = vrot.slane %v616_v60, 7  ;;  %v865_v3 = vrot.slane %v863_v2, 1 }
 0x37b   :  { %v570_v12 = vadd.f32 %v568_v11, %v560_v7  ;;  %v571_v15 = vadd.f32 %v568_v11, %v561_v8  ;;  %v572_v16 = vadd.f32 %v568_v11, %v562_v9  ;;  %v573_v17 = vadd.f32 %v568_v11, %v563_v10 }
 0x37d   :  { %v574_v20 = vmax.f32 %v570_v12, 0.0  ;;  %v575_v21 = vmax.f32 %v571_v15, 0.0  ;;  %v576_v22 = vmax.f32 %v572_v16, 0.0  ;;  %v577_v23 = vmax.f32 %v573_v17, 0.0 }
 0x37f   :  { %v578_v25 = vpack.c.bf16 %v575_v21, %v574_v20  ;;  %v579_v62 = vpack.c.bf16 %v577_v23, %v576_v22 }
 0x381   :  { %v608_v26 = vshrl.u32 %v578_v25, 16  ;;  %v620_v59 = vshrl.u32 %v579_v62, 16  ;;  %v623_v27 = vshll.u32 %v579_v62, 16  ;;  %v611_v30 = vshll.u32 %v578_v25, 16 }
 0x383   :  { %v610_v29 = vrot.slane %v608_v26, 7  ;;  %v622_v31 = vrot.slane %v620_v59, 7  ;;  %v860_v32 = vrot.slane %v623_v27, 1 }
 0x385   :  { %v613_v33 = vor.u32 %v611_v30, %v610_v29  ;;  %v625_v34 = vor.u32 %v623_v27, %v622_v31  ;;  %v1678_v35 = vor.u32 %v860_v32, %v620_v59 }
 0x387   :  { %v614_v36 = vsel %vm102_vm0, %v606_v61, %v613_v33  ;;  %v626_v37 = vsel %vm102_vm0, %v618_v28, %v625_v34  ;;  %v866_v4 = vsel %vm343_vm1, %v1678_v35, %v865_v3 }
 0x388   :  { %1286 = vmatprep.mubr.bf16.mxu1 %v614_v36 }
 0x389   :  { %1287 = vmatmul.mubr.bf16.vlgmr.msra.gmra.mrb[0].mxu1 %v626_v37 }
 0x38a   :  { %1291 = vmatpush3.bf16.msra.mxu1 %v1390_v40  ;;  %1306 = vmatprep.mubr.bf16.mxu1 %v578_v25  ;;  %v848_v40 = vrot.slane %v611_v30, 1 }
 0x38b   :  { %1292 = vmatprep.subr.bf16.mxu1 %v1391_v38 }
 0x38c   :  { %v849_v49 = vor.u32 %v848_v40, %v608_v26 }
 0x38e   :  { %1293 = vmatpush3.bf16.msra.mxu1 %v1391_v38  ;;  %v854_v52 = vsel %vm343_vm1, %v849_v49, %v853_v50 }
 0x38f   :  { %1294 = vmatprep.subr.bf16.mxu1 %v1392_v39 }
 0x392   :  { %1295 = vmatpush3.bf16.msra.mxu1 %v1392_v39 }
 0x393   :  { %1296 = vmatprep.subr.bf16.mxu1 %v1393_v41 }
 0x396   :  { %1297 = vmatpush3.bf16.msra.mxu1 %v1393_v41 }
 0x397   :  { %1298 = vmatprep.subr.bf16.mxu1 %v1394_v42 }
 0x39a   :  { %1299 = vmatpush3.bf16.msra.mxu1 %v1394_v42 }
 0x39b   :  { %1300 = vmatprep.subr.bf16.mxu1 %v1395_v43 }
 0x39e   :  { %1301 = vmatpush3.bf16.msra.mxu1 %v1395_v43 }
 0x39f   :  { %1302 = vmatprep.subr.bf16.mxu1 %v1396_v44 }
 0x3a2   :  { %1303 = vmatpush3.bf16.msra.mxu1 %v1396_v44 }
 0x3a3   :  { %1304 = vmatprep.subr.bf16.mxu1 %v1397_v46 }
 0x3a6   :  { %1305 = vmatpush3.bf16.msra.mxu1 %v1397_v46 }
 0x3a7   :  { %1310 = vmatprep.subr.bf16.mxu1 %v1398_v48 }
 0x3a9   :  { %1307 = vmatmul.mubr.bf16.vlgmr.msra.gmra.mrb[0].mxu1 %v579_v62 }
 0x3aa   :  { %1311 = vmatpush3.bf16.msra.mxu1 %v1398_v48  ;;  %1326 = vmatprep.mubr.bf16.mxu1 %v854_v52  ;;  %v1032_v48 = vld [vmem:[%s1724_s5] sm:$0x1]  ;;  %s1476_s5 = scalar_lea.vmem %s1090_s24, 512 }
 0x3ab   :  { %1312 = vmatprep.subr.bf16.mxu1 %v1399_v51  ;;  %p1477_p10 = scmp.ne.s32.totalorder %s1090_s24, %s1476_s5  ;;  %p1482_p12 = scmp.lt.s32.totalorder %s1476_s5, %s1476_s5 }
 0x3ad   :  { %p1483_p13 = por %p1482_p12, %p1481_p11 }
 0x3ae   :  { %1313 = vmatpush3.bf16.msra.mxu1 %v1399_v51  ;;  %v1053_v51 = vld [vmem:[%s1725_s6] sm:$0x1] }
 0x3af   :  { %1314 = vmatprep.subr.bf16.mxu1 %v1400_v54  ;;  %p1484_p0 = pnand %p1483_p13, %p1477_p10 }
 0x3b2   :  { %1315 = vmatpush3.bf16.msra.mxu1 %v1400_v54 }
 0x3b3   :  { %1316 = vmatprep.subr.bf16.mxu1 %v1401_v55 }
 0x3b6   :  { %1317 = vmatpush3.bf16.msra.mxu1 %v1401_v55 }
 0x3b7   :  { %1318 = vmatprep.subr.bf16.mxu1 %v1402_v56 }
 0x3ba   :  { %1319 = vmatpush3.bf16.msra.mxu1 %v1402_v56 }
 0x3bb   :  { %1320 = vmatprep.subr.bf16.mxu1 %v1403_v57 }
 0x3be   :  { %1321 = vmatpush3.bf16.msra.mxu1 %v1403_v57 }
 0x3bf   :  { %1322 = vmatprep.subr.bf16.mxu1 %v1404_v63 }
 0x3c2   :  { %1323 = vmatpush3.bf16.msra.mxu1 %v1404_v63 }
 0x3c3   :  { %1324 = vmatprep.subr.bf16.mxu1 %v1405_v1 }
 0x3c6   :  { %1325 = vmatpush3.bf16.msra.mxu1 %v1405_v1 }
 0x3c9   :  { %1327 = vmatmul.mubr.bf16.vlgmr.msra.gmra.mrb[0].mxu1 %v866_v4 }
 0x49c   :  { %v1328_v7 = vpop.f32.mrb[0].mxu1 }
 0x49d   :  { %v968_v8 = vpop.f32.mrb[1].mxu1  ;;  %v989_v12 = vadd.f32 %v1328_v7, %v1611_v13 }
 0x49e   :  { %v987_v9 = vadd.f32 %v968_v8, %v1601_v5  ;;  %v1329_v10 = vpop.f32.mrb[2].mxu1 }
 0x49f   :  { %v971_v11 = vpop.f32.mrb[3].mxu1  ;;  %v990_v17 = vadd.f32 %v1329_v10, %v1613_v14  ;;  %v1002_v20 = vmul.f32 %v989_v12, %v989_v12 }
 0x4a0   :  { %v988_v15 = vadd.f32 %v971_v11, %v1603_v6  ;;  %v1000_v16 = vmul.f32 %v987_v9, %v987_v9 }
 0x4a1   :  { %v1003_v23 = vmul.f32 %v990_v17, %v990_v17 }
 0x4a2   :  { %v991_v18 = vadd.f32 %v988_v15, %v987_v9  ;;  %v1001_v19 = vmul.f32 %v988_v15, %v988_v15 }
 0x4a4   :  { %v992_v21 = vadd.f32 %v991_v18, %v989_v12  ;;  %v1004_v22 = vadd.f32 %v1001_v19, %v1000_v16 }
 0x4a6   :  { %v993_v24 = vadd.f32 %v992_v21, %v990_v17  ;;  %v1005_v60 = vadd.f32 %v1004_v22, %v1002_v20 }
 0x4a8   :  { %v994_v25 = vrot.slane %v993_v24, 4  ;;  %v1006_v62 = vadd.f32 %v1005_v60, %v1003_v23 }
 0x4aa   :  { %v995_v5 = vadd.f32 %v994_v25, %v993_v24  ;;  %v1007_v26 = vrot.slane %v1006_v62, 4 }
 0x4ac   :  { %v996_v59 = vrot.slane %v995_v5, 2  ;;  %v1008_v27 = vadd.f32 %v1007_v26, %v1006_v62 }
 0x4ae   :  { %v997_v13 = vadd.f32 %v996_v59, %v995_v5  ;;  %v1009_v61 = vrot.slane %v1008_v27, 2 }
 0x4b0   :  { %v998_v6 = vrot.slane %v997_v13, 1  ;;  %v1010_v28 = vadd.f32 %v1009_v61, %v1008_v27 }
 0x4b2   :  { %v1011_v29 = vrot.slane %v1010_v28, 1  ;;  %v999_v14 = vadd.f32 %v998_v6, %v997_v13 }
 0x4b4   :  { %v1012_v30 = vadd.f32 %v1011_v29, %v1010_v28 }
 0x4b6   :  { %v1013_v31 = vsel %vm510_vm2, %v999_v14, %v1012_v30 }
 0x4b7   :  { %1014 = vrot.lane.b32.xlu0 %v1013_v31, %s1509_s25 }
 0x529   :  { %v1015_v32 = vpop.permute.xlu0 %1014 }
 0x52a   :  { %v1016_v33 = vadd.f32 %v1015_v32, %v1013_v31 }
 0x52c   :  { %1017 = vrot.lane.b32.xlu1 %v1016_v33, %s1512_s2 }
 0x59e   :  { %v1018_v34 = vpop.permute.xlu1 %1017 }
 0x59f   :  { %v1019_v35 = vadd.f32 %v1018_v34, %v1016_v33 }
 0x5a1   :  { %1020 = vrot.lane.b32.xlu0 %v1019_v35, %s1513_s12 }
 0x613   :  { %v1021_v36 = vpop.permute.xlu0 %1020 }
 0x614   :  { %v1022_v37 = vadd.f32 %v1021_v36, %v1019_v35 }
 0x616   :  { %1023 = vrot.lane.b32.xlu1 %v1022_v37, %s1505_s11 }
 0x688   :  { %v1024_v38 = vpop.permute.xlu1 %1023 }
 0x689   :  { %v1025_v39 = vadd.f32 %v1024_v38, %v1022_v37 }
 0x68b   :  { %v1026_v41 = vmul.f32 0.001953125, %v1025_v39 }
 0x68d   :  { %v1027_v42 = vmul.f32 %v1026_v41, %v1026_v41 }
 0x68f   :  { %v1029_v43 = vrot.slane %v1027_v42, 7 }
 0x691   :  { %v1031_v44 = vsub.f32 %v1026_v41, %v1029_v43 }
 0x693   :  { %v1033_v45 = vadd.f32 1e-05, %v1031_v44 }
 0x695   :  { %1408 = vrsqrt.f32 %v1033_v45 }
 0x69f   :  { %v1409_v46 = vpop.eup %1408 }
 0x6a0   :  { %v1042_v40 = vrot.slane %v1409_v46, %v1660_v53 }
 0x6a2   :  { %v1043_v47 = vcombine.high %v1042_v40, %v1042_v40 }
 0x6a4   :  { %v1050_v49 = vrot.slane %v1043_v47, %v1660_v53 }
 0x6a6   :  { %v1052_v50 = vmul.f32 %v1050_v49, %v1032_v48 }
 0x6a8   :  { %v1054_v52 = vmul.f32 %v1052_v50, %v1026_v41  ;;  %v1060_v54 = vrot.slane %v1052_v50, %v1666_v58 }
 0x6aa   :  { %v1055_v55 = vsub.f32 %v1053_v51, %v1054_v52  ;;  %v1062_v56 = vmul.f32 %v1060_v54, %v987_v9  ;;  %v1063_v63 = vmul.f32 %v1060_v54, %v988_v15  ;;  %v1064_v0 = vmul.f32 %v1060_v54, %v989_v12 }
 0x6ab   :  { %v1065_v1 = vmul.f32 %v1060_v54, %v990_v17 }
 0x6ac   :  { %v1070_v57 = vrot.slane %v1055_v55, %v1666_v58 }
 0x6ae   :  { %v1072_v2 = vadd.f32 %v1070_v57, %v1062_v56  ;;  %v1073_v3 = vadd.f32 %v1070_v57, %v1063_v63  ;;  %v1074_v53 = vadd.f32 %v1070_v57, %v1064_v0  ;;  %v1075_v4 = vadd.f32 %v1070_v57, %v1065_v1 }
 0x6b0   :  { %v1076_v7 = vmax.f32 %v1072_v2, 0.0  ;;  %v1077_v8 = vmax.f32 %v1073_v3, 0.0  ;;  %v1078_v10 = vmax.f32 %v1074_v53, 0.0  ;;  %v1079_v11 = vmax.f32 %v1075_v4, 0.0 }
 0x6b2   :  { %1080 = vst [vmem:[#allocation9] sm:$0xff] %v1076_v7  ;;  %1081 = vst [vmem:[#allocation9 + $0x8] sm:$0xff] %v1077_v8 }
 0x6b3   :  { %1082 = vst [vmem:[#allocation9 + $0x10] sm:$0xff] %v1078_v10  ;;  %1083 = vst [vmem:[#allocation9 + $0x18] sm:$0xff] %v1079_v11 }
 0x6b4   :  { %1487 = shalt.err (!%p1484_p0)
}
 0x6b5   :  { %s1488_s27 = scalar_lea.hbm %s1726_s7, 512 }
 0x6b6   :  { %p1489_p1 = scmp.ne.s32.totalorder %s1726_s7, %s1488_s27  ;;  %p1492_p2 = scmp.lt.u32.totalorder %s1488_s27, %s1726_s7 }
 0x6b8   :  { %p1494_p3 = pnand %p1492_p2, %p1489_p1 }
 0x6ba   :  { %1497 = shalt.err (!%p1494_p3)
}
 0x6bb   :  { %1095 = dma.vmem_to_hbm [thread:$0]  %s1090_s24, 512, %s1726_s7, [#allocation5], %s1508_s1, %s1508_s1, %s1509_s25  }
 0x6bc   :  { %1502 = dma.done.wait [#allocation5], 512  }
 0x6bd   :  { %1503 = vsyncadd [#allocation5], 4294966784 }
 0x6be   :  { %1099 = vsyncpa [#allocation4], 1 }
 0x6bf   :  { %1100 = vsyncpa [#allocation7], 1 }
 0x6c0   :  { %1101 = vsyncpa [#allocation5], 1 }

</bundles_post_ra>
